<compile_context>
chip_gen: v5e
topology: v5e:2x2
jax: 0.10.0
libtpu: 0.0.40
codegen_flags: <defaults>
</compile_context>

<pallas_src>
import jax
import jax.numpy as jnp
from jax.experimental import pallas as pl
from jax.experimental.pallas import tpu as pltpu


# ---------------- tiling helpers ----------------
def _round_up(x, m):
    return ((x + m - 1) // m) * m


def _cdiv(a, b):
    return -(-a // b)


def _pick_spatial_tiling(s, c_in, c_out, dtype_bytes=4,
                         vmem_budget_bytes=8 * 1024 * 1024, max_tile=2048):
    """Pick (tile, num_tiles, padded_extent) for the spatial (lane) axis.

    Tiles are multiples of 128, balanced across the grid so padding waste is
    bounded by < 128 columns per tile, and sized so the double-buffered
    input+output blocks stay within a conservative VMEM budget (safe on
    v5e/v6e/v7x default scoped VMEM)."""
    s128 = _round_up(s, 128)
    per_col = 2 * (c_in + c_out) * dtype_bytes        # in + out, double-buffered
    cap = max(128, (vmem_budget_bytes // per_col) // 128 * 128)
    cap = min(cap, max_tile)
    num_tiles = max(1, _cdiv(s128, cap))
    tn = _round_up(_cdiv(s128, num_tiles), 128)       # balanced, lane-aligned
    s_pad = tn * num_tiles
    return tn, num_tiles, s_pad


# ---------------- 1x1 conv hot path: W @ X per batch ----------------
def _conv1x1_kernel(x_ref, w_ref, b_ref, o_ref):
    # x_ref: (C_in, tn), w_ref: (C_out, C_in), b_ref: (C_out, 1), o_ref: (C_out, tn)
    acc = jnp.dot(w_ref[...], x_ref[...], preferred_element_type=jnp.float32)
    o_ref[...] = (acc + b_ref[...]).astype(o_ref.dtype)


def conv1x1_nchw(x, w, b):
    """1x1 Conv2d in native NCHW layout: y[n] = W @ x[n] + bias.

    x: (B, C_in, T, V), w: (C_out, C_in), b: (C_out, 1) -> (B, C_out, T, V)
    """
    B, c_in, T, V = x.shape
    c_out = w.shape[0]
    S = T * V
    tn, num_tiles, S_pad = _pick_spatial_tiling(S, c_in, c_out)

    x3 = x.reshape(B, c_in, S)                        # free: T*V already contiguous
    if S_pad != S:
        x3 = jnp.pad(x3, ((0, 0), (0, 0), (0, S_pad - S)))

    grid = (B, num_tiles)
    y3 = pl.pallas_call(
        _conv1x1_kernel,
        out_shape=jax.ShapeDtypeStruct((B, c_out, S_pad), x.dtype),
        grid_spec=pltpu.PrefetchScalarGridSpec(
            num_scalar_prefetch=0,
            grid=grid,
            in_specs=[
                pl.BlockSpec((None, c_in, tn), lambda bi, j: (bi, 0, j)),
                pl.BlockSpec((c_out, c_in), lambda bi, j: (0, 0)),
                pl.BlockSpec((c_out, 1), lambda bi, j: (0, 0)),
            ],
            out_specs=pl.BlockSpec((None, c_out, tn), lambda bi, j: (bi, 0, j)),
        ),
        compiler_params=pltpu.CompilerParams(
            dimension_semantics=("parallel", "parallel")),
    )(x3, w, b)

    if S_pad != S:
        y3 = y3[:, :, :S]
    return y3.reshape(B, c_out, T, V)


# ---------------- channel zero-padding path ----------------
def _pad_channels_kernel(x_ref, o_ref):
    # x_ref: (C_in, tn), o_ref: (C_out, tn) with C_out > C_in.
    # Two disjoint slice stores: copy the first C_in rows, zero the rest.
    c_in = x_ref.shape[0]
    c_out, tn = o_ref.shape
    o_ref[:c_in, :] = x_ref[...]
    o_ref[c_in:, :] = jnp.zeros((c_out - c_in, tn), o_ref.dtype)


def pad_channels(x, c_out):
    B, c_in, T, V = x.shape
    S = T * V
    tn, num_tiles, S_pad = _pick_spatial_tiling(S, c_in, c_out)

    x3 = x.reshape(B, c_in, S)
    if S_pad != S:
        x3 = jnp.pad(x3, ((0, 0), (0, 0), (0, S_pad - S)))

    grid = (B, num_tiles)
    y3 = pl.pallas_call(
        _pad_channels_kernel,
        out_shape=jax.ShapeDtypeStruct((B, c_out, S_pad), x.dtype),
        grid_spec=pltpu.PrefetchScalarGridSpec(
            num_scalar_prefetch=0,
            grid=grid,
            in_specs=[pl.BlockSpec((None, c_in, tn), lambda bi, j: (bi, 0, j))],
            out_specs=pl.BlockSpec((None, c_out, tn), lambda bi, j: (bi, 0, j)),
        ),
        compiler_params=pltpu.CompilerParams(
            dimension_semantics=("parallel", "parallel")),
    )(x3)

    if S_pad != S:
        y3 = y3[:, :, :S]
    return y3.reshape(B, c_out, T, V)


# ---------------- Align module ----------------
class Align:
    def __init__(self, c_in, c_out, key):
        self.c_in = c_in
        self.c_out = c_out
        self.weight = None       # (C_out, C_in), kernel-ready layout
        self.bias = None         # (C_out, 1),    kernel-ready layout
        if c_in > c_out:
            # Matches nn.Conv2d's uniform(-1/sqrt(fan_in), 1/sqrt(fan_in)) init.
            k1, k2 = jax.random.split(key)
            fan_in = float(c_in)  # kernel_size = (1, 1)
            bound = 1.0 / (fan_in ** 0.5)
            self.weight = jax.random.uniform(
                k1, (c_out, c_in), jnp.float32, minval=-bound, maxval=bound)
            self.bias = jax.random.uniform(
                k2, (c_out, 1), jnp.float32, minval=-bound, maxval=bound)

    def __call__(self, x):
        if self.c_in > self.c_out:
            return conv1x1_nchw(x, self.weight, self.bias)
        elif self.c_in < self.c_out:
            return pad_channels(x, self.c_out)
        else:
            return x


if __name__ == "__main__":
    key = jax.random.PRNGKey(0)
    k_x1, k_x1b, k_x2, k_x3, k_p1, k_p2, k_p3 = jax.random.split(key, 7)

    B, T, V = 2, 8, 16

    # --- path 1: c_in > c_out -> 1x1 conv (Pallas matmul, NCHW-native) ---
    c_in, c_out = 8, 4
    x = jax.random.normal(k_x1, (B, c_in, T, V), dtype=jnp.float32)
    align_conv = Align(c_in, c_out, k_p1)
    y = align_conv(x)
    jax.block_until_ready(y)
    ref = jnp.einsum("bctv,oc->botv", x, align_conv.weight) + \
        align_conv.bias.reshape(1, c_out, 1, 1)
    assert y.shape == (B, c_out, T, V)
    assert jnp.allclose(y, ref, atol=1e-5, rtol=1e-5)

    # --- path 1b: ragged spatial extent (T*V not a multiple of 128) ---
    Vb = 10
    xb = jax.random.normal(k_x1b, (B, c_in, T, Vb), dtype=jnp.float32)
    yb = align_conv(xb)
    jax.block_until_ready(yb)
    refb = jnp.einsum("bctv,oc->botv", xb, align_conv.weight) + \
        align_conv.bias.reshape(1, c_out, 1, 1)
    assert yb.shape == (B, c_out, T, Vb)
    assert jnp.allclose(yb, refb, atol=1e-5, rtol=1e-5)

    # --- path 2: c_in < c_out -> zero pad channels (tiled Pallas copy) ---
    c_in2, c_out2 = 4, 8
    x2 = jax.random.normal(k_x2, (B, c_in2, T, V), dtype=jnp.float32)
    align_pad = Align(c_in2, c_out2, k_p2)
    y2 = align_pad(x2)
    jax.block_until_ready(y2)
    assert y2.shape == (B, c_out2, T, V)
    assert jnp.allclose(y2[:, :c_in2], x2)
    assert jnp.all(y2[:, c_in2:] == 0)

    # --- path 3: c_in == c_out -> identity ---
    x3 = jax.random.normal(k_x3, (B, c_in2, T, V), dtype=jnp.float32)
    align_id = Align(c_in2, c_in2, k_p3)
    y3 = align_id(x3)
    jax.block_until_ready(y3)
    assert jnp.array_equal(y3, x3)

    print("KERNEL_OK")
</pallas_src>

<mosaic_0001>
module attributes {stable_mosaic.version = 11 : i64} {
  func.func @_conv1x1_kernel(%arg0: i32, %arg1: i32, %arg2: memref<1x8x128xf32, #tpu.memory_space<vmem>>, %arg3: memref<4x8xf32, #tpu.memory_space<vmem>>, %arg4: memref<4x1xf32, #tpu.memory_space<vmem>>, %arg5: memref<1x4x128xf32, #tpu.memory_space<vmem>>) attributes {dimension_semantics = [#tpu.dimension_semantics<parallel>, #tpu.dimension_semantics<parallel>], iteration_bounds = array<i64: 2, 1>, scalar_prefetch = 0 : i64, scratch_operands = 0 : i64, tpu.core_type = #tpu.core_type<tc>, window_params = [{transform_indices = @transform_0, window_bounds = array<i64: 1, 8, 128>}, {pipeline_mode = #tpu.pipeline_mode<synchronous>, transform_indices = @transform_1, window_bounds = array<i64: 4, 8>}, {pipeline_mode = #tpu.pipeline_mode<synchronous>, transform_indices = @transform_2, window_bounds = array<i64: 4, 1>}, {transform_indices = @transform_3, window_bounds = array<i64: 1, 4, 128>}]} {
    %c0 = arith.constant 0 : index
    %c0_0 = arith.constant 0 : index
    %0 = vector.load %arg3[%c0, %c0_0] : memref<4x8xf32, #tpu.memory_space<vmem>>, vector<4x8xf32>
    %c0_1 = arith.constant 0 : index
    %c0_2 = arith.constant 0 : index
    %c0_3 = arith.constant 0 : index
    %1 = vector.load %arg2[%c0_1, %c0_2, %c0_3] : memref<1x8x128xf32, #tpu.memory_space<vmem>>, vector<1x8x128xf32>
    %2 = vector.shape_cast %1 : vector<1x8x128xf32> to vector<8x128xf32>
    %cst = arith.constant dense<0.000000e+00> : vector<4x128xf32>
    %3 = tpu.matmul %0, %2, %cst {dimension_numbers = #tpu.dot_dimension_numbers<[1], [0], [0], [1], [0, 0, 1, 1], [], []>} : vector<4x8xf32>, vector<8x128xf32>, vector<4x128xf32> -> vector<4x128xf32>
    %c0_4 = arith.constant 0 : index
    %c0_5 = arith.constant 0 : index
    %4 = vector.load %arg4[%c0_4, %c0_5] : memref<4x1xf32, #tpu.memory_space<vmem>>, vector<4x1xf32>
    %5 = vector.broadcast %4 : vector<4x1xf32> to vector<4x128xf32>
    %6 = arith.addf %3, %5 : vector<4x128xf32>
    %c0_6 = arith.constant 0 : index
    %c0_7 = arith.constant 0 : index
    %c0_8 = arith.constant 0 : index
    %7 = vector.load %arg5[%c0_6, %c0_7, %c0_8] : memref<1x4x128xf32, #tpu.memory_space<vmem>>, vector<1x4x128xf32>
    %8 = vector.shape_cast %7 : vector<1x4x128xf32> to vector<4x128xf32>
    %9 = vector.shape_cast %6 : vector<4x128xf32> to vector<1x4x128xf32>
    tpu.vector_store %arg5[%c0_6, %c0_7, %c0_8], %9 {strides = array<i32>} : memref<1x4x128xf32, #tpu.memory_space<vmem>>, vector<1x4x128xf32>,
    return
  }
  func.func @transform_0(%arg0: i32, %arg1: i32) -> (i32, i32, i32) {
    %c0_i32 = arith.constant 0 : i32
    %c0_i32_0 = arith.constant 0 : i32
    return %arg0, %c0_i32, %arg1 : i32, i32, i32
  }
  func.func @transform_1(%arg0: i32, %arg1: i32) -> (i32, i32) {
    %c0_i32 = arith.constant 0 : i32
    %c0_i32_0 = arith.constant 0 : i32
    %c0_i32_1 = arith.constant 0 : i32
    return %c0_i32, %c0_i32_0 : i32, i32
  }
  func.func @transform_2(%arg0: i32, %arg1: i32) -> (i32, i32) {
    %c0_i32 = arith.constant 0 : i32
    %c0_i32_0 = arith.constant 0 : i32
    %c0_i32_1 = arith.constant 0 : i32
    return %c0_i32, %c0_i32_0 : i32, i32
  }
  func.func @transform_3(%arg0: i32, %arg1: i32) -> (i32, i32, i32) {
    %c0_i32 = arith.constant 0 : i32
    %c0_i32_0 = arith.constant 0 : i32
    return %arg0, %c0_i32, %arg1 : i32, i32, i32
  }
}

</mosaic_0001>

<bundles_post_ra>
// kernel: tpu_custom_call.1
= control target key start
LH: loop header
LB: loop body
LE: loop exit
PB: predicated region body
PF: predicated region fallthrough
CT: control target
= control target key end

     0   :  { %8 = vsyncpa [#allocation3], 0  ;;  %s675_s0 = inlined_call_operand.hbm [shape: f32[2,8,128], index: 0, kind: input, shape index: {}]   ;;  %s676_s1 = inlined_call_operand.vmem [shape: f32[4,8], index: 1, kind: input, shape index: {}]   ;;  %s677_s2 = inlined_call_operand.vmem [shape: f32[4,1], index: 2, kind: input, shape index: {}]   ;;  %s678_s3 = inlined_call_operand.hbm [shape: f32[2,4,128], index: 3, kind: output, shape index: {}]  }
   0x1   :  { %10 = vsyncpa [#allocation3 + $0x1], 0 }
   0x2   :  { %11 = vsyncpa [#allocation4], 0 }
   0x3   :  { %13 = vsyncpa [#allocation4 + $0x1], 0  ;;  %s548_s12 = smov 0   ;;  %s550_s13 = smov 0  }
   0x4   :  { %s552_s14 = smov 0   ;;  %s554_s15 = smov 0  }
   0x5   :  { %s556_s16 = smov 0   ;;  %s558_s17 = smov 0  }
   0x6 LB: > { %s335_s18 = sadd.s32 4294967295, %s525_s17   ;;  %s336_s19 = sadd.s32 4294967294, %s525_s17   ;;  %s525_s17 = sphi %s558_s17, %s19_s17   ;;  %s521_s16 = sphi %s556_s16, %s687_s16   ;;  %s517_s15 = sphi %s554_s15, %s686_s15   ;;  %s513_s14 = sphi %s552_s14, %s685_s14   ;;  %s509_s13 = sphi %s550_s13, %s684_s13   ;;  %s505_s12 = sphi %s548_s12, %s683_s12  }
   0x7   : > { %s31_s20 = sadd.s32 1, %s521_s16  ;;  %s40_s21 = sadd.s32 1, %s513_s14 }
   0x8   : > { %p33_p0 = scmp.ge.s32.totalorder %s31_s20, 2  ;;  %p47_p1 = scmp.ne.s32.totalorder %s513_s14, %s509_s13 }
   0x9   : > { %p48_p2 = scmp.eq.s32.totalorder %s525_s17, 0  ;;  %p53_p3 = scmp.ne.s32.totalorder %s509_s13, %s505_s12 }
   0xa   : > { %s689_s20 = smov (%p33_p0, %s31_s20), 0  ;;  %p54_p5 = scmp.eq.s32.totalorder %s335_s18, 0 }
   0xb   : > { %p589_p4 = por %p48_p2, %p47_p1  ;;  %s35_s23 = ssub.s32 %s521_s16, %s689_s20 }
   0xc   : > { %p121_p6 = scmp.eq.s32.totalorder %s335_s18, 1  ;;  %p38_p7 = scmp.eq.s32.totalorder %s35_s23, 0 }
   0xd   : > { %p595_p8 = por %p54_p5, %p53_p3  ;;  %p127_p10 = scmp.eq.s32.totalorder %s336_s19, 1 }
   0xe   : > { %p599_p9 = por %p121_p6, %p47_p1  ;;  %p338_p12 = scmp.ge.s32.totalorder %s525_s17, 2 }
   0xf   : > { %s604_s26 = scalar_select %p38_p7, %s513_s14, %s40_s21  }
  0x10   : > { %p606_p11 = por %p127_p10, %p53_p3  ;;  %p361_p13 = scmp.lt.s32.totalorder %s525_s17, 2 }
  0x11   : > { %s153_s28 = sand.u32 1, %s513_s14   ;;  %s340_s30 = sshll.u32 %s521_s16, 3 }
  0x12   : > { %s339_s29 = sshll.u32 %s153_s28, 3  ;;  %s162_s6 = scalar_lea.hbm %s675_s0, %s340_s30 }
  0x13   : > { %s157_s7 = scalar_lea.vmem [#allocation2], %s339_s29  ;;  %s164_s9 = sshll.u32 %s162_s6, 4  ;;  %s165_s9 = int_to_ptr.hbm [resolvable:$true] %s164_s9 }
  0x14   : > { %s166_s8 = sshll.u32 %s157_s7, 4  ;;  %p354_p0 = pnand %p361_p13, %p589_p4  ;;  %s167_s8 = int_to_ptr.vmem [resolvable:$true] %s166_s8 }
  0x15   : > { %p341_p1 = scmp.ge.s32.totalorder %s525_s17, 1  ;;  %p171_p2 = scmp.lt.s32.totalorder %s525_s17, 3 }
  0x16   : > { %s154_s10 = scalar_lea.sflag [#allocation3], %s153_s28 }
  0x17   : > { %356 = dma.hbm_to_vmem [thread:$0]  (!%p354_p0), %s165_s9, 128, %s167_s8, %s154_s10  }
  0x18   : > { %p172_p3 = pnand %p341_p1, %p171_p2 }
  0x19   : > { %s622_s11 = sand.u32 (!%p172_p3), 1, %s509_s13  }
  0x1a   : > { %175 = sbr.rel (%p172_p3) target bundleno = 165 (0xa5), region = 32  ;;  %s342_s18 = sshll.u32 (!%p172_p3), %s622_s11, 3 }
  0x1b   : > { %s178_s19 = scalar_lea.sflag (!%p172_p3), [#allocation3], %s622_s11  ;;  %s181_s21 = scalar_lea.vmem (!%p172_p3), [#allocation2], %s342_s18 }
  0x1f   : > { %496 = dma.done.wait (%p595_p8), %s178_s19, 128  }
  0x20   : > { %498 = vsyncadd (%p595_p8), %s178_s19, 4294967168  ;;  %v527_v0 = vmov 0   ;;  %vm213_vm0 = vcmask 64512   ;;  %v206_v1 = vld [vmem:[%s181_s21] sm:$0xff]  ;;  %s343_s24 = sshll.u32 %s622_s11, 2  ;;  %s346_s30 = sshll.u32 %s517_s15, 2 }
  0x21   : > { %412 = vset.pattern.permute.xlu0 %v527_v0  ;;  %v205_v2 = vld [vmem:[%s676_s1] sm:$0xf]  ;;  %232 = vmatpush.msra.mxu0 %v206_v1  ;;  %s250_s6 = scalar_lea.hbm %s678_s3, %s346_s30  ;;  %s204_s7 = scalar_lea.vmem [#allocation5], %s343_s24 }
  0x22   : > { %v207_v3 = vld [vmem:[%s677_s2] sm:$0xf]  ;;  %344 = vmatmul.msk.f32.vlgmr.msra.gmra.mxu0 %vm213_vm0, %v205_v2  ;;  %s252_s8 = sshll.u32 %s204_s7, 4  ;;  %s254_s9 = sshll.u32 %s250_s6, 4  ;;  %s253_s8 = int_to_ptr.vmem [resolvable:$true] %s252_s8  ;;  %s255_s9 = int_to_ptr.hbm [resolvable:$true] %s254_s9 }
  0x23   : > { %210 = vperm.xlu0 %412, %v207_v3   ;;  %s239_s10 = scalar_lea.sflag [#allocation4], %s622_s11  ;;  %s457_s18 = sshra.s32 %s255_s9, 4  ;;  %s458_s18 = int_to_ptr.hbm [resolvable:$true] %s457_s18 }
  0x24   : > { %s459_s19 = scalar_lea.hbm %s458_s18, 4  ;;  %s463_s22 = scalar_lea.hbm %s678_s3, 8 }
  0x25   : > { %p460_p4 = scmp.ne.s32.totalorder %s458_s18, %s459_s19  ;;  %p464_p7 = scmp.lt.s32.totalorder %s458_s18, %s678_s3 }
  0x26   : > { %p465_p8 = scmp.lt.s32.totalorder %s463_s22, %s459_s19 }
  0x27   : > { %p461_p5 = pnand %p460_p4, %p599_p9 }
  0x28   : > { %p466_p10 = por %p465_p8, %p464_p7 }
  0x29   : > { %p462_p6 = pneg %p461_p5 }
  0x2b   : > { %p467_p13 = pnand %p466_p10, %p462_p6 }
  0x95   : > { %v211_v4 = vpop.permute.xlu0 %210 }
  0x9f   : > { %v234_v5 = vpop.f32.mrf.mxu0 }
  0xa0   : > { %v235_v6 = vadd.f32 %v234_v5, %v211_v4 }
  0xa2   : > { %237 = vst [vmem:[%s204_s7] sm:$0xf] %v235_v6 }
  0xa3   : > { %470 = shalt.err (!%p467_p13)
}
  0xa4   : > { %351 = dma.vmem_to_hbm [thread:$0]  (%p599_p9), %s253_s8, 64, %s255_s9, %s239_s10  }
  0xa5 PF: > { %s266_s11 = sand.u32 1, %s505_s12   ;;  %p358_p0 = pnand %p338_p12, %p606_p11 }
  0xa6   : > { %s267_s29 = scalar_lea.sflag [#allocation4], %s266_s11 }
  0xa7   : > { %p359_p1 = pneg %p358_p0 }
  0xa9   : > { %500 = dma.done.wait (%p359_p1), %s267_s29, 64  }
  0xaa   : > { %502 = vsyncadd (%p359_p1), %s267_s29, 4294967232  ;;  %s19_s17 = sadd.s32 1, %s525_s17   ;;  %s683_s12 = smov %s509_s13 }
  0xab   : > { %p16_p2 = scmp.ge.s32.totalorder %s19_s17, 4   ;;  %s684_s13 = smov %s513_s14 }
  0xac   : > { %s685_s14 = smov %s604_s26  ;;  %s686_s15 = smov %s521_s16 }
  0xad   : > { %s687_s16 = smov %s689_s20  ;;  %18 = sbr.rel (!%p16_p2) target bundleno = 6 (0x6), region = 77 }
  0xb2   :  { %273 = vsyncpa [#allocation3], 1 }
  0xb3   :  { %275 = vsyncpa [#allocation3 + $0x1], 1 }
  0xb4   :  { %276 = vsyncpa [#allocation4], 1 }
  0xb5   :  { %278 = vsyncpa [#allocation4 + $0x1], 1 }

</bundles_post_ra>
